<compile_context>
chip_gen: v7x
topology: tpu7x:2x2x1
jax: 0.10.0
libtpu: 0.0.40
codegen_flags: <defaults>
</compile_context>

<pallas_src>
import functools

import jax
import jax.numpy as jnp
from jax.experimental import pallas as pl
from jax.experimental.pallas import tpu as pltpu

BETA = 0.9        # snn.Leaky beta (inert for a single step from zero state)
THRESHOLD = 1.0   # snn.Leaky default firing threshold
_VMEM_LIMIT = 48 * 1024 * 1024   # safe on v5e/v6e (128 MiB) and v7x (64 MiB)


# ----------------------------------------------------------------------------
# Kernel 1: patch conv (stride == kernel) + Leaky neuron single step (spike)
# Grid = (patch tiles, K tiles).  bf16 MXU operands, f32 accumulator scratch;
# bias + threshold applied on the last K step only.
# ----------------------------------------------------------------------------
def _conv_leaky_kernel(patch_ref, w_ref, b_ref, *rest):
    acc_ref = rest[-1]
    out_refs = rest[:-1]
    k = pl.program_id(1)

    @pl.when(k == 0)
    def _():
        acc_ref[...] = jnp.zeros_like(acc_ref)

    acc_ref[...] += jnp.dot(patch_ref[...], w_ref[...],
                            preferred_element_type=jnp.float32)

    @pl.when(k == pl.num_programs(1) - 1)
    def _():
        mem = acc_ref[...] + b_ref[...]
        # single step, zero hidden state: spike = heaviside(mem - threshold)
        # (strict '>' matches snntorch's (mem - threshold) > 0 firing rule;
        #  equality-at-threshold is an edge case).
        out_refs[0][...] = (mem > THRESHOLD).astype(out_refs[0].dtype)
        if len(out_refs) > 1:      # optional membrane output (validation only)
            out_refs[1][...] = mem.astype(out_refs[1].dtype)


def conv_leaky(patches, w_mat, bias, *, tile_p=512, tile_k=1024, with_mem=False):
    P, K = patches.shape
    C = w_mat.shape[1]
    tp = min(tile_p, P)            # multiple of 8 or == P
    tk = min(tile_k, K)            # multiple of 128 or == K; must divide K
    if K % tk != 0:
        tk = K
    grid = (pl.cdiv(P, tp), K // tk)

    out_block = pl.BlockSpec((tp, C), lambda i, k: (i, 0))
    if with_mem:
        out_shape = (jax.ShapeDtypeStruct((P, C), jnp.float32),
                     jax.ShapeDtypeStruct((P, C), jnp.float32))
        out_specs = (out_block, out_block)
    else:
        out_shape = jax.ShapeDtypeStruct((P, C), jnp.float32)
        out_specs = out_block

    cost = pl.CostEstimate(
        flops=2 * P * K * C,
        transcendentals=0,
        bytes_accessed=(2 * P * K + 2 * K * C + 4 * C
                        + 4 * P * C * (2 if with_mem else 1)))

    return pl.pallas_call(
        _conv_leaky_kernel,
        out_shape=out_shape,
        grid=grid,
        in_specs=[pl.BlockSpec((tp, tk), lambda i, k: (i, k)),   # bf16 patches
                  pl.BlockSpec((tk, C), lambda i, k: (k, 0)),    # bf16 weights
                  pl.BlockSpec((1, C), lambda i, k: (0, 0))],    # f32 bias
        out_specs=out_specs,
        scratch_shapes=[pltpu.VMEM((tp, C), jnp.float32)],       # f32 acc
        compiler_params=pltpu.CompilerParams(
            dimension_semantics=("parallel", "arbitrary"),
            vmem_limit_bytes=_VMEM_LIMIT),
        cost_estimate=cost,
    )(patches, w_mat, bias.reshape(1, C).astype(jnp.float32))


# ----------------------------------------------------------------------------
# Kernel 2: per-batch K / fused value-output projection of the spike tokens.
# Hoisted out of the attention kernel so the attention grid has no scratch
# carry.  Emits k token-major (B, M, C) and voT feature-major (B, H*C, M),
# both bf16.  One small (M, C) transpose per batch element.
# ----------------------------------------------------------------------------
def _kv_vo_kernel(sp_ref, wk_ref, bk_ref, wvoT_ref, k_ref, voT_ref):
    sp = sp_ref[0]                                         # (M, C) f32 {0,1}
    sp_b = sp.astype(jnp.bfloat16)
    kproj = (jnp.dot(sp_b, wk_ref[...], preferred_element_type=jnp.float32)
             + bk_ref[...])                                # (M, C)
    k_ref[0] = kproj.astype(k_ref.dtype)
    spT_b = sp.T.astype(jnp.bfloat16)                      # (C, M)
    voT_ref[0] = jnp.dot(wvoT_ref[...], spT_b,
                         preferred_element_type=jnp.float32
                         ).astype(voT_ref.dtype)           # (H*C, M)


def project_kv(spikes_bmc, wk_b, bk_row, wvoT_b):
    B, M, C = spikes_bmc.shape
    HC = wvoT_b.shape[0]

    cost = pl.CostEstimate(
        flops=B * (2 * M * C * C + 2 * M * C * HC),
        transcendentals=0,
        bytes_accessed=(4 * B * M * C + 2 * C * C + 2 * HC * C
                        + 2 * B * M * C + 2 * B * HC * M))

    return pl.pallas_call(
        _kv_vo_kernel,
        out_shape=(jax.ShapeDtypeStruct((B, M, C), jnp.bfloat16),
                   jax.ShapeDtypeStruct((B, HC, M), jnp.bfloat16)),
        grid=(B,),
        in_specs=[pl.BlockSpec((1, M, C), lambda b: (b, 0, 0)),  # spike tokens
                  pl.BlockSpec((C, C), lambda b: (0, 0)),        # wk (bf16)
                  pl.BlockSpec((1, C), lambda b: (0, 0)),        # bk (f32)
                  pl.BlockSpec((HC, C), lambda b: (0, 0))],      # (wv@wo)^T
        out_specs=(pl.BlockSpec((1, M, C), lambda b: (b, 0, 0)),
                   pl.BlockSpec((1, HC, M), lambda b: (b, 0, 0))),
        compiler_params=pltpu.CompilerParams(
            dimension_semantics=("parallel",),
            vmem_limit_bytes=_VMEM_LIMIT),
        cost_estimate=cost,
    )(spikes_bmc, wk_b, bk_row, wvoT_b)


# ----------------------------------------------------------------------------
# Kernel 3: multi-head cross-attention, feature-major end-to-end.
# Grid = (batch, query tiles), both "parallel" (no scratch carry).
# Per tile:   q^T = wq^T @ x          (C, TQ)     contraction C
#   per head: s^T = k_h @ q_h^T       (M, TQ)     contraction dh (bf16)
#             softmax over M (sublane axis), EUP approx reciprocal
#             acc^T += voT_h @ p^T    (C, TQ)     contraction M (bf16)
# Output stored lane-dense as (B, C, N) — no transposes anywhere in the tile.
# ----------------------------------------------------------------------------
def _mha_kernel(xq_ref, k_ref, voT_ref, wqT_ref, bq_ref, bo_ref, o_ref,
                *, num_heads):
    C = wqT_ref.shape[0]
    dh = C // num_heads

    # q^T projection; 1/sqrt(dh) already folded into wqT / bq by the wrapper.
    xT = xq_ref[0].astype(jnp.bfloat16)                          # (C, TQ)
    qT = jnp.dot(wqT_ref[...], xT,
                 preferred_element_type=jnp.float32) + bq_ref[...]  # (C, TQ)

    k = k_ref[0]                                                 # (M, C) bf16
    voT = voT_ref[0]                                             # (H*C, M) bf16

    accT = jnp.zeros(o_ref.shape[1:], jnp.float32)               # (C, TQ)
    # Static unroll over heads (num_heads is small).
    # TODO(synk): for large num_heads switch to lax.fori_loop + pl.ds to bound
    # vreg live ranges (per review); static unroll is fine at 4-8 heads.
    for h in range(num_heads):
        qTh = qT[h * dh:(h + 1) * dh, :].astype(jnp.bfloat16)    # (dh, TQ)
        kh = k[:, h * dh:(h + 1) * dh]                           # (M, dh)
        sT = jnp.dot(kh, qTh, preferred_element_type=jnp.float32)  # (M, TQ)
        # softmax over the key axis (sublanes); keep it in f32.
        sT = sT - jnp.max(sT, axis=0, keepdims=True)
        pT = jnp.exp(sT)
        pT = pT * pl.reciprocal(jnp.sum(pT, axis=0, keepdims=True), approx=True)
        voTh = voT[h * C:(h + 1) * C, :]                         # (C, M)
        accT += jnp.dot(voTh, pT.astype(jnp.bfloat16),
                        preferred_element_type=jnp.float32)      # (C, TQ)

    o_ref[0] = (accT + bo_ref[...]).astype(o_ref.dtype)


def multi_head_attention(x_flat, k_tok, voT, wqT_b, bq_col, bo_col, num_heads,
                         *, tile_q=512):
    """x_flat: (B, C, N); k_tok: (B, M, C) bf16; voT: (B, H*C, M) bf16."""
    B, C, N = x_flat.shape
    _, M, _ = k_tok.shape
    HC = voT.shape[1]

    tq = min(tile_q, N)                    # multiple of 128 or == N
    nt = pl.cdiv(N, tq)
    kern = functools.partial(_mha_kernel, num_heads=num_heads)

    cost = pl.CostEstimate(
        flops=B * (2 * N * C * C + 2 * N * M * C * (1 + num_heads)),
        transcendentals=B * num_heads * N * M,
        bytes_accessed=(8 * B * C * N + 2 * B * M * C + 2 * B * HC * M
                        + 2 * C * C + 8 * C))

    return pl.pallas_call(
        kern,
        out_shape=jax.ShapeDtypeStruct((B, C, N), x_flat.dtype),
        grid=(B, nt),
        in_specs=[
            pl.BlockSpec((1, C, tq), lambda b, n: (b, 0, n)),   # q tile (streamed)
            pl.BlockSpec((1, M, C), lambda b, n: (b, 0, 0)),    # k (per-batch resident)
            pl.BlockSpec((1, HC, M), lambda b, n: (b, 0, 0)),   # voT (per-batch resident)
            pl.BlockSpec((C, C), lambda b, n: (0, 0)),          # wq^T*scale (bf16 resident)
            pl.BlockSpec((C, 1), lambda b, n: (0, 0)),          # bq*scale (column)
            pl.BlockSpec((C, 1), lambda b, n: (0, 0)),          # bo + bv@wo (column)
        ],
        out_specs=pl.BlockSpec((1, C, tq), lambda b, n: (b, 0, n)),
        compiler_params=pltpu.CompilerParams(
            # No scratch carry -> both axes megacore-shardable on v7x.
            dimension_semantics=("parallel", "parallel"),
            vmem_limit_bytes=_VMEM_LIMIT),
        cost_estimate=cost,
    )(x_flat, k_tok, voT, wqT_b, bq_col, bo_col)


# ----------------------------------------------------------------------------
# Full forward (glue in plain JAX, hot paths in the Pallas kernels above)
# ----------------------------------------------------------------------------
def efficient_mha_forward(x, conv_w, conv_b, attn_params, reduction_ratio,
                          num_heads, *, tile_p=512, tile_k=1024, tile_q=512,
                          with_mem=False):
    B, C, H, W = x.shape
    R = reduction_ratio
    Ho, Wo = H // R, W // R
    M = Ho * Wo
    dh = C // num_heads
    scale = 1.0 / (dh ** 0.5)
    wq, bq, wk, bk, wv, bv, wo, bo = attn_params

    # Non-overlapping patch extraction == Conv2d(k=R, stride=R) as im2col.
    # TODO(synk): im2col still materializes one transposed patch pass in HBM;
    # an in-kernel (b, row-strip) gather would remove this extra HBM pass.
    patches = x.reshape(B, C, Ho, R, Wo, R).transpose(0, 2, 4, 1, 3, 5)
    patches = patches.reshape(B * M, C * R * R).astype(jnp.bfloat16)
    w_mat = conv_w.reshape(C, C * R * R).T.astype(jnp.bfloat16)   # (C*R*R, C)

    conv_out = conv_leaky(patches, w_mat, conv_b,
                          tile_p=tile_p, tile_k=tile_k, with_mem=with_mem)
    if with_mem:
        spikes, mem = conv_out
    else:
        spikes, mem = conv_out, None

    # Fold / pre-cast attention weights once in the wrapper.
    wqT_b = (wq.T * scale).astype(jnp.bfloat16)                   # (C, C)
    bq_col = (bq * scale).reshape(C, 1).astype(jnp.float32)       # (C, 1)
    wk_b = wk.astype(jnp.bfloat16)                                # (C, C)
    bk_row = bk.reshape(1, C).astype(jnp.float32)
    # Per-head fused value->output weight: Wvo_h = wv[:, sl] @ wo[sl, :];
    # stored transposed + stacked along heads -> (H*C, C), bf16.
    wv_r = wv.reshape(C, num_heads, dh)
    wo_r = wo.reshape(num_heads, dh, C)
    wvoT_b = jnp.einsum('chd,hdf->hfc', wv_r, wo_r).reshape(
        num_heads * C, C).astype(jnp.bfloat16)
    # v-bias path: softmax rows sum to 1, so it collapses to a constant bias.
    bo_col = (bo + bv @ wo).reshape(C, 1).astype(jnp.float32)     # (C, 1)

    kv_tokens = spikes.reshape(B, M, C)                           # (B, M, C)
    k_tok, voT = project_kv(kv_tokens, wk_b, bk_row, wvoT_b)

    x_flat = x.reshape(B, C, H * W)                               # (B, C, N) - no transpose
    out = multi_head_attention(x_flat, k_tok, voT, wqT_b, bq_col, bo_col,
                               num_heads, tile_q=tile_q)          # (B, C, N)
    out = out.reshape(B, C, H, W)                                 # free reshape (NCHW)
    return out, spikes, mem


# ----------------------------------------------------------------------------
# Pure-JAX references (for sanity checking the kernels)
# ----------------------------------------------------------------------------
def reference_conv_mem(x, conv_w, conv_b, R):
    B, C, H, W = x.shape
    conv = jax.lax.conv_general_dilated(
        x, conv_w, (R, R), 'VALID', dimension_numbers=('NCHW', 'OIHW', 'NCHW'))
    conv = conv + conv_b.reshape(1, C, 1, 1)
    return conv.transpose(0, 2, 3, 1).reshape(-1, C)


def reference_attention(x, spikes, attn_params, num_heads):
    B, C, H, W = x.shape
    M = spikes.shape[0] // B
    kv = spikes.reshape(B, M, C)
    q_tok = x.reshape(B, C, H * W).transpose(0, 2, 1)
    wq, bq, wk, bk, wv, bv, wo, bo = attn_params
    q = q_tok @ wq + bq
    k = kv @ wk + bk
    v = kv @ wv + bv
    dh = C // num_heads

    def split(t):
        Bt, L, _ = t.shape
        return t.reshape(Bt, L, num_heads, dh).transpose(0, 2, 1, 3)

    qh, kh, vh = split(q), split(k), split(v)
    s = jnp.einsum('bhnd,bhmd->bhnm', qh, kh) / (dh ** 0.5)
    p = jax.nn.softmax(s, axis=-1)
    oh = jnp.einsum('bhnm,bhmd->bhnd', p, vh)
    o = oh.transpose(0, 2, 1, 3).reshape(B, H * W, C)
    out = o @ wo + bo
    return out.transpose(0, 2, 1).reshape(B, C, H, W)


if __name__ == "__main__":
    B, C, H, W = 2, 32, 16, 16
    R, num_heads = 4, 4

    keys = jax.random.split(jax.random.PRNGKey(0), 12)
    x = jax.random.normal(keys[0], (B, C, H, W), jnp.float32)

    # Deterministic synthetic parameters (shapes as implied by the module).
    conv_w = jax.random.normal(keys[1], (C, C, R, R), jnp.float32) * 0.05
    conv_b = jax.random.normal(keys[2], (C,), jnp.float32) * 0.1
    ws = 1.0 / (C ** 0.5)
    wq = jax.random.normal(keys[3], (C, C), jnp.float32) * ws
    bq = jax.random.normal(keys[4], (C,), jnp.float32) * 0.02
    wk = jax.random.normal(keys[5], (C, C), jnp.float32) * ws
    bk = jax.random.normal(keys[6], (C,), jnp.float32) * 0.02
    wv = jax.random.normal(keys[7], (C, C), jnp.float32) * ws
    bv = jax.random.normal(keys[8], (C,), jnp.float32) * 0.02
    wo = jax.random.normal(keys[9], (C, C), jnp.float32) * ws
    bo = jax.random.normal(keys[10], (C,), jnp.float32) * 0.02
    attn_params = (wq, bq, wk, bk, wv, bv, wo, bo)

    # Small tiles (tile_p=8, tile_k=128, tile_q=128) so the multi-step
    # pipelined grids (incl. the conv K-reduction axis) are exercised even at
    # this toy size; at production sizes use the defaults.
    out, spikes, mem = efficient_mha_forward(
        x, conv_w, conv_b, attn_params, R, num_heads,
        tile_p=8, tile_k=128, tile_q=128, with_mem=True)
    out = jax.block_until_ready(out)
    assert out.shape == (B, C, H, W)

    # Sanity checks against plain-JAX f32 references.  bf16 MXU operands with
    # f32 accumulation everywhere -> slightly looser tolerances.
    mem_ref = reference_conv_mem(x, conv_w, conv_b, R)
    assert jnp.allclose(mem, mem_ref, rtol=3e-2, atol=5e-2), "conv mismatch"
    out_ref = reference_attention(x, spikes, attn_params, num_heads)
    assert jnp.allclose(out, out_ref, rtol=3e-2, atol=3e-2), "attention mismatch"

    print("KERNEL_OK")
</pallas_src>

<mosaic_0001>
module attributes {stable_mosaic.version = 11 : i64} {
  func.func @_conv_leaky_kernel(%arg0: i32, %arg1: i32, %arg2: memref<8x128xbf16, #tpu.memory_space<vmem>>, %arg3: memref<128x32xbf16, #tpu.memory_space<vmem>>, %arg4: memref<1x32xf32, #tpu.memory_space<vmem>>, %arg5: memref<8x32xf32, #tpu.memory_space<vmem>>, %arg6: memref<8x32xf32, #tpu.memory_space<vmem>>, %arg7: memref<8x32xf32, #tpu.memory_space<vmem>>) attributes {dimension_semantics = [#tpu.dimension_semantics<parallel>, #tpu.dimension_semantics<arbitrary>], iteration_bounds = array<i64: 4, 4>, scalar_prefetch = 0 : i64, scratch_operands = 1 : i64, tpu.core_type = #tpu.core_type<tc>, window_params = [{transform_indices = @transform_0, window_bounds = array<i64: 8, 128>}, {transform_indices = @transform_1, window_bounds = array<i64: 128, 32>}, {pipeline_mode = #tpu.pipeline_mode<synchronous>, transform_indices = @transform_2, window_bounds = array<i64: 1, 32>}, {transform_indices = @transform_3, window_bounds = array<i64: 8, 32>}, {transform_indices = @transform_4, window_bounds = array<i64: 8, 32>}]} {
    %c0_i32 = arith.constant 0 : i32
    %0 = arith.cmpi eq, %arg1, %c0_i32 : i32
    %1 = arith.extui %0 : i1 to i32
    %c0_i32_0 = arith.constant 0 : i32
    %2 = arith.cmpi ne, %1, %c0_i32_0 : i32
    scf.if %2 {
      %cst_9 = arith.constant 0.000000e+00 : f32
      %12 = vector.broadcast %cst_9 : f32 to vector<8x32xf32>
      %c0_10 = arith.constant 0 : index
      %c0_11 = arith.constant 0 : index
      %13 = vector.load %arg7[%c0_10, %c0_11] : memref<8x32xf32, #tpu.memory_space<vmem>>, vector<8x32xf32>
      tpu.vector_store %arg7[%c0_10, %c0_11], %12 {strides = array<i32>} : memref<8x32xf32, #tpu.memory_space<vmem>>, vector<8x32xf32>,
    } else {
    }
    %c0 = arith.constant 0 : index
    %c0_1 = arith.constant 0 : index
    %3 = vector.load %arg7[%c0, %c0_1] : memref<8x32xf32, #tpu.memory_space<vmem>>, vector<8x32xf32>
    %c0_2 = arith.constant 0 : index
    %c0_3 = arith.constant 0 : index
    %4 = vector.load %arg2[%c0_2, %c0_3] : memref<8x128xbf16, #tpu.memory_space<vmem>>, vector<8x128xbf16>
    %c0_4 = arith.constant 0 : index
    %c0_5 = arith.constant 0 : index
    %5 = vector.load %arg3[%c0_4, %c0_5] : memref<128x32xbf16, #tpu.memory_space<vmem>>, vector<128x32xbf16>
    %cst = arith.constant dense<0.000000e+00> : vector<8x32xf32>
    %6 = tpu.matmul %4, %5, %cst {dimension_numbers = #tpu.dot_dimension_numbers<[1], [0], [0], [1], [0, 0, 1, 1], [], []>} : vector<8x128xbf16>, vector<128x32xbf16>, vector<8x32xf32> -> vector<8x32xf32>
    %7 = arith.addf %3, %6 : vector<8x32xf32>
    %c0_6 = arith.constant 0 : index
    %c0_7 = arith.constant 0 : index
    %8 = vector.load %arg7[%c0_6, %c0_7] : memref<8x32xf32, #tpu.memory_space<vmem>>, vector<8x32xf32>
    tpu.vector_store %arg7[%c0_6, %c0_7], %7 {strides = array<i32>} : memref<8x32xf32, #tpu.memory_space<vmem>>, vector<8x32xf32>,
    %c3_i32 = arith.constant 3 : i32
    %9 = arith.cmpi eq, %arg1, %c3_i32 : i32
    %10 = arith.extui %9 : i1 to i32
    %c0_i32_8 = arith.constant 0 : i32
    %11 = arith.cmpi ne, %10, %c0_i32_8 : i32
    scf.if %11 {
      %c0_9 = arith.constant 0 : index
      %c0_10 = arith.constant 0 : index
      %12 = vector.load %arg7[%c0_9, %c0_10] : memref<8x32xf32, #tpu.memory_space<vmem>>, vector<8x32xf32>
      %c0_11 = arith.constant 0 : index
      %c0_12 = arith.constant 0 : index
      %13 = vector.load %arg4[%c0_11, %c0_12] : memref<1x32xf32, #tpu.memory_space<vmem>>, vector<1x32xf32>
      %14 = vector.broadcast %13 : vector<1x32xf32> to vector<8x32xf32>
      %15 = arith.addf %12, %14 : vector<8x32xf32>
      %cst_13 = arith.constant 1.000000e+00 : f32
      %16 = vector.broadcast %cst_13 : f32 to vector<8x32xf32>
      %17 = arith.cmpf ogt, %15, %16 : vector<8x32xf32>
      %18 = arith.extui %17 : vector<8x32xi1> to vector<8x32xi32>
      %19 = arith.sitofp %18 : vector<8x32xi32> to vector<8x32xf32>
      %c0_14 = arith.constant 0 : index
      %c0_15 = arith.constant 0 : index
      %20 = vector.load %arg5[%c0_14, %c0_15] : memref<8x32xf32, #tpu.memory_space<vmem>>, vector<8x32xf32>
      tpu.vector_store %arg5[%c0_14, %c0_15], %19 {strides = array<i32>} : memref<8x32xf32, #tpu.memory_space<vmem>>, vector<8x32xf32>,
      %c0_16 = arith.constant 0 : index
      %c0_17 = arith.constant 0 : index
      %21 = vector.load %arg6[%c0_16, %c0_17] : memref<8x32xf32, #tpu.memory_space<vmem>>, vector<8x32xf32>
      tpu.vector_store %arg6[%c0_16, %c0_17], %15 {strides = array<i32>} : memref<8x32xf32, #tpu.memory_space<vmem>>, vector<8x32xf32>,
    } else {
    }
    return
  }
  func.func @transform_0(%arg0: i32, %arg1: i32) -> (i32, i32) {
    %c0_i32 = arith.constant 0 : i32
    return %arg0, %arg1 : i32, i32
  }
  func.func @transform_1(%arg0: i32, %arg1: i32) -> (i32, i32) {
    %c0_i32 = arith.constant 0 : i32
    %c0_i32_0 = arith.constant 0 : i32
    return %arg1, %c0_i32 : i32, i32
  }
  func.func @transform_2(%arg0: i32, %arg1: i32) -> (i32, i32) {
    %c0_i32 = arith.constant 0 : i32
    %c0_i32_0 = arith.constant 0 : i32
    %c0_i32_1 = arith.constant 0 : i32
    return %c0_i32, %c0_i32_0 : i32, i32
  }
  func.func @transform_3(%arg0: i32, %arg1: i32) -> (i32, i32) {
    %c0_i32 = arith.constant 0 : i32
    %c0_i32_0 = arith.constant 0 : i32
    return %arg0, %c0_i32 : i32, i32
  }
  func.func @transform_4(%arg0: i32, %arg1: i32) -> (i32, i32) {
    %c0_i32 = arith.constant 0 : i32
    %c0_i32_0 = arith.constant 0 : i32
    return %arg0, %c0_i32 : i32, i32
  }
}

</mosaic_0001>

<bundles_post_ra>
// kernel: tpu_custom_call.1
= control target key start
LH: loop header
LB: loop body
LE: loop exit
PB: predicated region body
PF: predicated region fallthrough
CT: control target
= control target key end

     0   :  { %10 = vsyncpa [#allocation4], 0  ;;  %s1032_s0 = inlined_call_operand.vmem [shape: bf16[32,512], index: 0, kind: input, shape index: {}]   ;;  %s1033_s1 = inlined_call_operand.vmem [shape: bf16[512,32], index: 1, kind: input, shape index: {}]   ;;  %s1034_s2 = inlined_call_operand.vmem [shape: f32[1,32], index: 2, kind: input, shape index: {}]   ;;  %s1035_s3 = inlined_call_operand.hbm [shape: f32[32,32], index: 3, kind: output, shape index: {0}]   ;;  %s1036_s4 = inlined_call_operand.hbm [shape: f32[32,32], index: 4, kind: output, shape index: {1}]  }
   0x1   :  { %12 = vsyncpa [#allocation4 + $0x1], 0 }
   0x2   :  { %13 = vsyncpa [#allocation6], 0 }
   0x3   :  { %15 = vsyncpa [#allocation6 + $0x1], 0  ;;  %s843_s15 = smov 0   ;;  %s845_s16 = smov 0  }
   0x4   :  { %s847_s17 = smov 0   ;;  %s849_s18 = smov 0  }
   0x5   :  { %s851_s19 = smov 0   ;;  %s853_s20 = smov 0  }
   0x6   :  { %s855_s21 = smov 0   ;;  %s857_s22 = smov 0  }
   0x7 LB: > { %1040 = sst [smem:[#allocation9_spill]] %s802_s20  ;;  %s538_s23 = sadd.s32 4294967295, %s810_s22   ;;  %s810_s22 = sphi %s857_s22, %s21_s22   ;;  %s806_s21 = sphi %s855_s21, %s1049_s21   ;;  %s802_s20 = sphi %s853_s20, %s1048_s20   ;;  %s798_s19 = sphi %s851_s19, %s1047_s19   ;;  %s794_s18 = sphi %s849_s18, %s1046_s18   ;;  %s790_s17 = sphi %s847_s17, %s1052_s17   ;;  %s786_s16 = sphi %s845_s16, %s1051_s16   ;;  %s782_s15 = sphi %s843_s15, %s1050_s15  }
   0x8   : > { %1041 = sst [smem:[#allocation10_spill]] %s806_s21  ;;  %s539_s24 = sadd.s32 4294967294, %s810_s22  }
   0x9   : > { %s30_s25 = sadd.s32 1, %s802_s20  ;;  %s33_s26 = sadd.s32 1, %s806_s21 }
   0xa   : > { %p31_p0 = scmp.ge.s32.totalorder %s30_s25, 4  ;;  %p125_p1 = scmp.ne.s32.totalorder %s790_s17, %s786_s16 }
   0xb   : > { %p126_p2 = scmp.eq.s32.totalorder %s538_s23, 15  ;;  %p131_p4 = scmp.ne.s32.totalorder %s786_s16, %s782_s15 }
   0xc   : > { %s1054_s25 = smov (%p31_p0, %s30_s25), 0  ;;  %s1056_s26 = smov (!%p31_p0, %s33_s26), %s806_s21 }
   0xd   : > { %1042 = sst [smem:[#allocation11_spill]] %s1054_s25  ;;  %p892_p3 = por %p126_p2, %p125_p1 }
   0xe   : > { %p35_p5 = scmp.ge.s32.totalorder %s1056_s26, 4  ;;  %p132_p6 = scmp.eq.s32.totalorder %s539_s24, 15 }
   0xf   : > { %p542_p7 = scmp.ge.s32.totalorder %s810_s22, 1  ;;  %p199_p8 = scmp.lt.s32.totalorder %s810_s22, 17 }
  0x10   : > { %s1058_s26 = smov (%p35_p5, %s1056_s26), 0  ;;  %p902_p9 = por %p132_p6, %p131_p4 }
  0x11   : > { %1044 = sst [smem:[#allocation12_spill]] %s1058_s26  ;;  %p200_p10 = pnand %p542_p7, %p199_p8 }
  0x12   : > { %s112_s29 = ssub.s32 %s806_s21, %s1058_s26  ;;  %s115_s30 = sadd.s32 1, %s790_s17 }
  0x13   : > { %p113_p11 = scmp.eq.s32.totalorder %s112_s29, 0  ;;  %203 = sbr.rel (%p200_p10) target bundleno = 346 (0x15a), region = 32 }
  0x14   : > { %s913_s6 = sand.u32 (!%p200_p10), 1, %s786_s16   ;;  %p238_p12 = scmp.lt.s32.totalorder (!%p200_p10), %s798_s19, 3 }
  0x15   : > { %s910_s5 = scalar_select %p113_p11, %s790_s17, %s115_s30  }
  0x16   : > { %s543_s7 = sshll.u32 (!%p200_p10), %s913_s6, 3  ;;  %p240_p13 = scmp.lt.s32.totalorder (!%p200_p10), %s794_s18, 3 }
  0x17   : > { %s547_s11 = sshll.u32 (!%p200_p10), %s794_s18, 4  ;;  %s931_s21 = scalar_lea.vmem (!%p200_p10), [#allocation3], %s543_s7 }
  0x18   : > { %p247_p0 = scmp.lt.s32.totalorder (!%p200_p10), %s547_s11, 63  ;;  %s933_s20 = scalar_lea.vmem (!%p200_p10), [#allocation5], %s543_s7 }
  0x19   : > { %p549_p1 = scmp.ne.s32.totalorder (!%p200_p10), %s794_s18, 0 }
  0x1a   : > { %s239_s8 = scalar_select %p238_p12, %s798_s19, 3 }
  0x1b   : > { %s241_s9 = scalar_select %p240_p13, %s794_s18, 3 }
  0x1c   : > { %s545_s10 = sshll.u32 %s239_s8, 2  ;;  %s1060_s11 = smov (!%p247_p0, %s547_s11), 63  ;;  %vm257_vm0 = vcmask (!%p549_p1), 261120   ;;  %v812_v0 = vmov (!%p549_p1), 0.0  }
  0x1d   : > { %s243_s12 = sadd.s32 %s545_s10, %s241_s9  ;;  %s548_s29 = sshll.u32 %s1060_s11, 2  ;;  %258 = vst.msk [vmem:[#allocation2] sm:$0xff] (!%p549_p1), %vm257_vm0, %v812_v0 }
  0x1e   : > { %s546_s13 = sshll.u32 %s243_s12, 2  ;;  %s929_s25 = scalar_lea.vmem %s1033_s1, %s548_s29 }
  0x1f   : > { %s924_s24 = scalar_lea.vmem %s1032_s0, %s546_s13  ;;  %256 = sbr.rel (%p549_p1) target bundleno = 38 (0x26), region = 36 }
  0x26 PF: > { %v676_v1 = vld [vmem:[%s929_s25] sm:$0xff]   ;;  %v813_v2 = vmov 0.0   ;;  %v677_v3 = vld [vmem:[%s929_s25 + $0x8] sm:$0xff]   ;;  %vm814_vm1 = vmmov 0   ;;  %v678_v4 = vld [vmem:[%s929_s25 + $0x10] sm:$0xff]   ;;  %vm366_vm2 = vcmask 261120  }
  0x27   : > { %576 = vmatprep.subr.bf16.mxu0 %v813_v2  ;;  %592 = vmatprep.mubr.msk.bf16.mxu0 %vm814_vm1, %v813_v2  ;;  %v679_v5 = vld [vmem:[%s929_s25 + $0x18] sm:$0xff]   ;;  %v680_v6 = vld [vmem:[%s929_s25 + $0x20] sm:$0xff]   ;;  %v681_v7 = vld [vmem:[%s929_s25 + $0x28] sm:$0xff]   ;;  %p558_p2 = scmp.ne.s32.totalorder %s794_s18, 3 }
  0x28   : > { %577 = vmatpush3.bf16.msra.mxu0 %v676_v1  ;;  %v682_v8 = vld [vmem:[%s929_s25 + $0x30] sm:$0xff]   ;;  %v683_v9 = vld [vmem:[%s929_s25 + $0x38] sm:$0xff]   ;;  %v260_v10 = vld [vmem:[%s924_s24] sm:$0xf]  ;;  %v815_v20 = vmov (!%p558_p2), 0.0  }
  0x29   : > { %578 = vmatprep.subr.bf16.mxu0 %v813_v2  ;;  %v259_v11 = vld [vmem:[#allocation2] sm:$0xff] }
  0x2a   : > { %v559_v18 = vld [vmem:[%s1034_s2] ss:$0 sm:$0xff] (!%p558_p2) }
  0x2c   : > { %579 = vmatpush3.bf16.msra.mxu0 %v677_v3 }
  0x2d   : > { %580 = vmatprep.subr.bf16.mxu0 %v813_v2 }
  0x30   : > { %581 = vmatpush3.bf16.msra.mxu0 %v678_v4 }
  0x31   : > { %582 = vmatprep.subr.bf16.mxu0 %v813_v2 }
  0x34   : > { %583 = vmatpush3.bf16.msra.mxu0 %v679_v5 }
  0x35   : > { %584 = vmatprep.subr.bf16.mxu0 %v813_v2 }
  0x38   : > { %585 = vmatpush3.bf16.msra.mxu0 %v680_v6 }
  0x39   : > { %586 = vmatprep.subr.bf16.mxu0 %v813_v2 }
  0x3c   : > { %587 = vmatpush3.bf16.msra.mxu0 %v681_v7 }
  0x3d   : > { %588 = vmatprep.subr.bf16.mxu0 %v813_v2 }
  0x40   : > { %589 = vmatpush3.bf16.msra.mxu0 %v682_v8 }
  0x41   : > { %590 = vmatprep.subr.bf16.mxu0 %v813_v2 }
  0x44   : > { %591 = vmatpush3.bf16.msra.mxu0 %v683_v9 }
  0x47   : > { %593 = vmatmul.mubr.bf16.vlgmr.msra.gmra.mrb[0].mxu0 %v260_v10 }
 0x117   : > { %371 = sbr.rel (%p558_p2) target bundleno = 298 (0x12a), region = 40 }
 0x11a   : > { %v359_v12 = vpop.f32.mrb[0].mxu0 }
 0x11b   : > { %v365_v13 = vadd.f32 %v359_v12, %v259_v11  ;;  %v594_v14 = vpop.f32.mrb[1].mxu0 }
 0x11c   : > { %v362_v15 = vpop.f32.mrb[2].mxu0 }
 0x11d   : > { %367 = vst.msk [vmem:[#allocation2] sm:$0xff] %vm366_vm2, %v365_v13  ;;  %v595_v16 = vpop.f32.mrb[3].mxu0 }
 0x124   : > { %v372_v17 = vld [vmem:[#allocation2] sm:$0xff] }
 0x125   : > { %v380_v19 = vadd.f32 %v559_v18, %v372_v17 }
 0x127   : > { %vm381_vm3 = vcmp.gt.f32.partialorder %v380_v19, 1.0  ;;  %385 = vst.msk [vmem:[%s933_s20] sm:$0xff] %vm366_vm2, %v380_v19 }
 0x128   : > { %v560_v21 = vsel %vm381_vm3, 1.0, %v815_v20 }
 0x129   : > { %384 = vst.msk [vmem:[%s931_s21] sm:$0xff] %vm366_vm2, %v560_v21 }
 0x12a PF: > { %s563_s18 = sshll.u32 %s798_s19, 7  ;;  %s405_s10 = sshll.u32 %s931_s21, 4  ;;  %s406_s10 = int_to_ptr.vmem [resolvable:$true] %s405_s10 }
 0x12b   : > { %s957_s9 = scalar_lea.hbm %s1035_s3, %s563_s18  ;;  %s387_s11 = scalar_lea.sflag [#allocation4], %s913_s6 }
 0x12c   : > { %s684_s12 = scalar_lea.vmem %s406_s10, 128  ;;  %s816_s13 = smov [#allocation3]  }
 0x12d   : > { %p685_p4 = scmp.ne.s32.totalorder %s406_s10, %s684_s12  ;;  %s688_s14 = sshll.u32 %s816_s13, 4  ;;  %s689_s14 = int_to_ptr.vmem [resolvable:$false] %s688_s14 }
 0x12e   : > { %s690_s23 = scalar_lea.vmem %s689_s14, 256  ;;  %p691_p7 = scmp.lt.s32.totalorder %s406_s10, %s689_s14 }
 0x12f   : > { %p686_p5 = pnand %p685_p4, %p892_p3  ;;  %p692_p8 = scmp.lt.s32.totalorder %s690_s23, %s684_s12 }
 0x131   : > { %p687_p6 = pneg %p686_p5  ;;  %p693_p10 = por %p692_p8, %p691_p7 }
 0x133   : > { %p694_p11 = pnand %p693_p10, %p687_p6 }
 0x135   : > { %697 = shalt.err (!%p694_p11)
}
 0x136   : > { %s698_s21 = scalar_lea.hbm %s957_s9, 128  ;;  %s702_s30 = scalar_lea.hbm %s1035_s3, 512 }
 0x137   : > { %p699_p12 = scmp.ne.s32.totalorder %s957_s9, %s698_s21  ;;  %p703_p1 = scmp.lt.u32.totalorder %s957_s9, %s1035_s3 }
 0x138   : > { %p704_p2 = scmp.lt.u32.totalorder %s702_s30, %s698_s21  ;;  %p706_p5 = scmp.lt.u32.totalorder %s698_s21, %s957_s9 }
 0x139   : > { %p700_p13 = pnand %p699_p12, %p892_p3 }
 0x13a   : > { %p705_p4 = por %p704_p2, %p703_p1 }
 0x13b   : > { %p701_p0 = pneg %p700_p13 }
 0x13c   : > { %p707_p6 = por %p706_p5, %p705_p4 }
 0x13e   : > { %p708_p7 = pnand %p707_p6, %p701_p0 }
 0x140   : > { %711 = shalt.err (!%p708_p7)
}
 0x141   : > { %596 = dma.vmem_to_hbm [thread:$0]  (%p892_p3), %s406_s10, 128, %s957_s9, %s387_s11  }
 0x142   : > { %s983_s12 = scalar_lea.hbm %s1036_s4, %s563_s18  ;;  %s418_s13 = sshll.u32 %s933_s20, 4  ;;  %s419_s13 = int_to_ptr.vmem [resolvable:$true] %s418_s13 }
 0x143   : > { %s392_s14 = scalar_lea.sflag [#allocation6], %s913_s6  ;;  %s712_s23 = scalar_lea.vmem %s419_s13, 128 }
 0x144   : > { %p713_p8 = scmp.ne.s32.totalorder %s419_s13, %s712_s23  ;;  %s817_s21 = smov [#allocation5]  }
 0x145   : > { %s716_s24 = sshll.u32 %s817_s21, 4  ;;  %s717_s24 = int_to_ptr.vmem [resolvable:$false] %s716_s24 }
 0x146   : > { %p714_p10 = pnand %p713_p8, %p892_p3  ;;  %s718_s29 = scalar_lea.vmem %s717_s24, 256 }
 0x147   : > { %p719_p12 = scmp.lt.s32.totalorder %s419_s13, %s717_s24  ;;  %p720_p13 = scmp.lt.s32.totalorder %s718_s29, %s712_s23 }
 0x148   : > { %p715_p11 = pneg %p714_p10 }
 0x149   : > { %p721_p0 = por %p720_p13, %p719_p12 }
 0x14b   : > { %p722_p1 = pnand %p721_p0, %p715_p11 }
 0x14d   : > { %725 = shalt.err (!%p722_p1)
}
 0x14e   : > { %s726_s19 = scalar_lea.hbm %s983_s12, 128  ;;  %s730_s18 = scalar_lea.hbm %s1036_s4, 512 }
 0x14f   : > { %p727_p2 = scmp.ne.s32.totalorder %s983_s12, %s726_s19  ;;  %p731_p6 = scmp.lt.u32.totalorder %s983_s12, %s1036_s4 }
 0x150   : > { %p732_p7 = scmp.lt.u32.totalorder %s730_s18, %s726_s19  ;;  %p734_p10 = scmp.lt.u32.totalorder %s726_s19, %s983_s12 }
 0x151   : > { %p728_p4 = pnand %p727_p2, %p892_p3 }
 0x152   : > { %p733_p8 = por %p732_p7, %p731_p6 }
 0x153   : > { %p729_p5 = pneg %p728_p4 }
 0x154   : > { %p735_p11 = por %p734_p10, %p733_p8 }
 0x156   : > { %p736_p12 = pnand %p735_p11, %p729_p5 }
 0x158   : > { %739 = shalt.err (!%p736_p12)
}
 0x159   : > { %597 = dma.vmem_to_hbm [thread:$0]  (%p892_p3), %s419_s13, 128, %s983_s12, %s392_s14  }
 0x15a PF: > { %p607_p13 = scmp.ge.s32.totalorder %s810_s22, 2  ;;  %s430_s11 = sand.u32 1, %s782_s15  }
 0x15b   : > { %s431_s30 = scalar_lea.sflag [#allocation4], %s430_s11 }
 0x15c   : > { %p601_p0 = pnand %p607_p13, %p902_p9 }
 0x15e   : > { %773 = dma.done.wait (!%p601_p0), %s431_s30, 128  }
 0x15f   : > { %775 = vsyncadd (!%p601_p0), %s431_s30, 4294967168  ;;  %s440_s26 = scalar_lea.sflag [#allocation6], %s430_s11 }
 0x160   : > { %777 = dma.done.wait (!%p601_p0), %s440_s26, 128  }
 0x161   : > { %779 = vsyncadd (!%p601_p0), %s440_s26, 4294967168  ;;  %s21_s22 = sadd.s32 1, %s810_s22   ;;  %s1046_s18 = sld [smem:[#allocation9_spill]] }
 0x162   : > { %p18_p1 = scmp.ge.s32.totalorder %s21_s22, 18   ;;  %s1047_s19 = sld [smem:[#allocation10_spill]] }
 0x163   : > { %s1048_s20 = sld [smem:[#allocation11_spill]]  ;;  %s1049_s21 = sld [smem:[#allocation12_spill]] }
 0x164   : > { %s1050_s15 = smov %s786_s16  ;;  %s1051_s16 = smov %s790_s17 }
 0x165   : > { %s1052_s17 = smov %s910_s5  ;;  %20 = sbr.rel (!%p18_p1) target bundleno = 7 (0x7), region = 95 }
 0x16c   :  { %445 = vsyncpa [#allocation4], 1 }
 0x16d   :  { %447 = vsyncpa [#allocation4 + $0x1], 1 }
 0x16e   :  { %448 = vsyncpa [#allocation6], 1 }
 0x16f   :  { %450 = vsyncpa [#allocation6 + $0x1], 1 }

</bundles_post_ra>
